<compile_context>
chip_gen: v6e
topology: v6e:2x2x1
jax: 0.10.0
libtpu: 0.0.40
codegen_flags: <defaults>
</compile_context>

<pallas_src>
import functools
import math

import jax
import jax.numpy as jnp
from jax.experimental import pallas as pl
from jax.experimental.pallas import tpu as pltpu

_LANE = 128
_SMALL_FALLBACK_ELEMS = 16384  # below this, XLA-fused reference wins


def _rope_kernel(x_ref, cos_ref, sin_ref, o_ref, *, compute_dtype):
    """out = x*cos + rotate_pairs(x)*sin on a lane-dense (rows, lane) tile."""
    x = x_ref[...].astype(compute_dtype)
    cos = cos_ref[...].astype(compute_dtype)
    sin = sin_ref[...].astype(compute_dtype)

    lane_axis = x.ndim - 1          # pltpu.roll needs a non-negative axis
    lane = x.shape[lane_axis]

    # Lane-parity mask: feature pairs (2k, 2k+1) start at even flat offsets
    # (D is even), so lane parity == feature parity and pairs never straddle
    # a 128-lane row.
    idx = jax.lax.broadcasted_iota(jnp.int32, x.shape, dimension=lane_axis)
    even = (idx & 1) == 0

    # Element i sees x[i+1] (roll by lane-1) and x[i-1] (roll by 1); the
    # cyclic wrap only lands on lanes whose parity never selects it.
    x_next = pltpu.roll(x, shift=lane - 1, axis=lane_axis)
    x_prev = pltpu.roll(x, shift=1, axis=lane_axis)

    # x2[..., 2k] = -x[..., 2k+1] ; x2[..., 2k+1] = x[..., 2k]
    x2 = jnp.where(even, -x_next, x_prev)

    o_ref[...] = (x * cos + x2 * sin).astype(o_ref.dtype)


def _strip_leading_ones(shape):
    i = 0
    while i < len(shape) - 1 and shape[i] == 1:
        i += 1
    return tuple(shape[i:])


def _device_kind():
    try:
        return jax.devices()[0].device_kind.lower()
    except Exception:
        return ""


def _default_rows_per_block(x_itemsize):
    # ~2 MiB x-blocks (1.5 MiB on v5e, whose HBM is slower); vmem_limit_bytes
    # is raised below so this compiles on v5e's 16 MiB default scoped VMEM.
    kind = _device_kind()
    target = (3 << 19) if ("v5 lite" in kind or "v5e" in kind) else (2 << 20)
    return max(512, target // (_LANE * x_itemsize))


def embed_rotary_reference(x, cos, sin):
    """Pure-JAX reference mirroring the PyTorch stack/reshape formulation."""
    x_even = x[..., ::2]
    x_odd = x[..., 1::2]
    x2 = jnp.stack([-x_odd, x_even], axis=-1).reshape(x.shape)
    return x * cos + x2 * sin


def embed_rotary(x, cos, sin, *, rows_per_block=None, use_pallas=None,
                 compute_dtype=jnp.float32):
    """RotaryPositionEncoding.embed_rotary(x, cos, sin) as a Pallas TPU kernel.

    x: (..., D) with D even.  cos/sin broadcastable to x.shape; when they are
    batch-invariant (shape equal to some trailing slice of x.shape, e.g.
    (N, D) for x (B, N, D)) they are NOT materialized to full shape -- the
    table block is reused across the batch grid axis directly from VMEM.
    Math runs in `compute_dtype` (default f32); output keeps x.dtype.
    """
    orig_shape = x.shape
    D = orig_shape[-1]
    if D % 2 != 0:
        raise ValueError("feature dim must be even")

    # Detect batch-invariant tables: stripped cos/sin shape == trailing x dims.
    t_shape = _strip_leading_ones(cos.shape)
    ok = (
        t_shape == _strip_leading_ones(sin.shape)
        and 1 <= len(t_shape) <= x.ndim
        and t_shape == tuple(orig_shape[x.ndim - len(t_shape):])
    )
    if not ok:
        # Rare/irregular broadcasting pattern: fall back to full-shape tables.
        cos = jnp.broadcast_to(cos, orig_shape)
        sin = jnp.broadcast_to(sin, orig_shape)
        t_shape = tuple(orig_shape)

    total = math.prod(orig_shape)
    table_elems = math.prod(t_shape)
    batch = total // table_elems            # leading dims reused across the table

    packable = (table_elems % _LANE == 0)
    if use_pallas is None:
        use_pallas = packable and total >= _SMALL_FALLBACK_ELEMS
    if not use_pallas or not packable:
        # Tiny or non-lane-packable shapes: fixed pallas_call overhead (or
        # masked sub-128 stores) would dominate; XLA-fused reference is faster.
        out = embed_rotary_reference(
            x.astype(compute_dtype), cos.astype(compute_dtype),
            sin.astype(compute_dtype))
        return out.astype(x.dtype)

    # Lane-dense re-layout: (batch, rows, 128).  The table shares the same flat
    # layout per batch, so it reshapes to (rows, 128) and block indices line up.
    lane = _LANE
    rows = table_elems // lane
    x3 = x.reshape(batch, rows, lane)
    cos2 = cos.reshape(rows, lane)
    sin2 = sin.reshape(rows, lane)

    x_isz = jnp.dtype(x.dtype).itemsize
    c_isz = jnp.dtype(cos.dtype).itemsize
    s_isz = jnp.dtype(sin.dtype).itemsize

    if rows_per_block is None:
        rows_per_block = _default_rows_per_block(x_isz)

    # Cap tile so 4 refs x 2 pipeline buffers stay ~<= 22 MiB (fits every
    # generation once vmem_limit_bytes is raised; headroom vs v7x 64 MiB).
    bytes_per_row = lane * (2 * x_isz + c_isz + s_isz)
    max_tr = max(8, (22 << 20) // (2 * bytes_per_row))
    tr = min(int(rows_per_block), max_tr, rows)
    if tr < rows:
        sub = max(8, 32 // x_isz)           # sublane packing: f32->8, bf16->16
        tr = max(sub, (tr // sub) * sub)
    else:
        tr = rows                           # full extent -> no (8,128) constraint

    grid = (pl.cdiv(rows, tr), batch)       # batch innermost: table block index
                                            # unchanged across batch -> no re-DMA

    vmem_limit = 2 * tr * bytes_per_row + (8 << 20)
    vmem_limit = int(min(max(vmem_limit, 16 << 20), 48 << 20))

    out3 = pl.pallas_call(
        functools.partial(_rope_kernel, compute_dtype=compute_dtype),
        out_shape=jax.ShapeDtypeStruct((batch, rows, lane), x.dtype),
        grid=grid,
        in_specs=[
            pl.BlockSpec((None, tr, lane), lambda i, b: (b, i, 0)),
            pl.BlockSpec((tr, lane), lambda i, b: (i, 0)),
            pl.BlockSpec((tr, lane), lambda i, b: (i, 0)),
        ],
        out_specs=pl.BlockSpec((None, tr, lane), lambda i, b: (b, i, 0)),
        compiler_params=pltpu.CompilerParams(
            dimension_semantics=("parallel", "parallel"),
            vmem_limit_bytes=vmem_limit,
        ),
    )(x3, cos2, sin2)

    return out3.reshape(orig_shape)


def make_cos_sin(positions, feature_dim):
    """Batch-invariant RoPE-style cos/sin tables (glue, plain JAX).

    positions: (N,) float positions -> cos/sin of shape (N, feature_dim) in
    f32, each frequency repeated for the (even, odd) pair.  Keeping the table
    batch-invariant lets embed_rotary reuse it across the batch grid axis.
    """
    div_term = jnp.exp(
        jnp.arange(0, feature_dim, 2, dtype=jnp.float32)
        * (-math.log(10000.0) / feature_dim)
    )  # (feature_dim // 2,)
    ang = positions[..., None].astype(jnp.float32) * div_term
    cos = jnp.repeat(jnp.cos(ang), 2, axis=-1)
    sin = jnp.repeat(jnp.sin(ang), 2, axis=-1)
    return cos, sin


if __name__ == "__main__":
    key = jax.random.PRNGKey(0)

    # Case 1: typical module shape (B, N, D) = (2, 8, 32) with batch-invariant
    # (N, D) tables reused across the batch grid axis.
    B, N, D = 2, 8, 32
    kx, key = jax.random.split(key)
    x = jax.random.normal(kx, (B, N, D), dtype=jnp.float32)
    pos = jnp.arange(N, dtype=jnp.float32)
    cos, sin = make_cos_sin(pos, D)                       # (N, D)
    ref = embed_rotary_reference(x, cos, sin)

    out = jax.block_until_ready(embed_rotary(x, cos, sin, use_pallas=True))
    assert out.shape == (B, N, D)
    assert jnp.allclose(out, ref, atol=1e-5, rtol=1e-5)

    # Case 2: PyTorch-style call with full-shape cos/sin (no batch reuse).
    cos_full = jnp.broadcast_to(cos, x.shape)
    sin_full = jnp.broadcast_to(sin, x.shape)
    out_full = jax.block_until_ready(
        embed_rotary(x, cos_full, sin_full, use_pallas=True))
    assert jnp.allclose(out_full, ref, atol=1e-5, rtol=1e-5)

    # Case 3: multi-step grid and a ragged final row block.
    B2, N2, D2 = 2, 64, 64
    kx, key = jax.random.split(key)
    xb = jax.random.normal(kx, (B2, N2, D2), dtype=jnp.float32)
    pos2 = jnp.arange(N2, dtype=jnp.float32)
    cos2, sin2 = make_cos_sin(pos2, D2)                   # (64, 64) -> 32 rows of 128
    refb = embed_rotary_reference(xb, cos2, sin2)

    outb = jax.block_until_ready(
        embed_rotary(xb, cos2, sin2, rows_per_block=16, use_pallas=True))
    assert jnp.allclose(outb, refb, atol=1e-5, rtol=1e-5)

    outc = jax.block_until_ready(
        embed_rotary(xb, cos2, sin2, rows_per_block=24, use_pallas=True))
    assert jnp.allclose(outc, refb, atol=1e-5, rtol=1e-5)

    # Case 4: bf16 activations, f32 tables, f32 in-kernel math, bf16 output.
    xh = xb.astype(jnp.bfloat16)
    refh = embed_rotary_reference(xh.astype(jnp.float32), cos2, sin2)
    outh = jax.block_until_ready(embed_rotary(xh, cos2, sin2, use_pallas=True))
    assert outh.dtype == jnp.bfloat16
    assert jnp.allclose(outh.astype(jnp.float32), refh, atol=2e-2, rtol=2e-2)

    # Case 5: tiny / non-128-packable shape dispatches to the pure-JAX path.
    xs = jax.random.normal(key, (2, 5, 6), dtype=jnp.float32)
    cs, ss = make_cos_sin(jnp.arange(5, dtype=jnp.float32), 6)
    outs = jax.block_until_ready(embed_rotary(xs, cs, ss))
    assert jnp.allclose(outs, embed_rotary_reference(xs, cs, ss),
                        atol=1e-5, rtol=1e-5)

    print("KERNEL_OK")
</pallas_src>

<mosaic_0001>
module attributes {stable_mosaic.version = 11 : i64} {
  func.func @_rope_kernel(%arg0: i32, %arg1: i32, %arg2: memref<1x2x128xf32, #tpu.memory_space<vmem>>, %arg3: memref<2x128xf32, #tpu.memory_space<vmem>>, %arg4: memref<2x128xf32, #tpu.memory_space<vmem>>, %arg5: memref<1x2x128xf32, #tpu.memory_space<vmem>>) attributes {dimension_semantics = [#tpu.dimension_semantics<parallel>, #tpu.dimension_semantics<parallel>], iteration_bounds = array<i64: 1, 2>, scalar_prefetch = 0 : i64, scratch_operands = 0 : i64, tpu.core_type = #tpu.core_type<tc>, window_params = [{transform_indices = @transform_0, window_bounds = array<i64: 1, 2, 128>}, {transform_indices = @transform_1, window_bounds = array<i64: 2, 128>}, {transform_indices = @transform_2, window_bounds = array<i64: 2, 128>}, {transform_indices = @transform_3, window_bounds = array<i64: 1, 2, 128>}]} {
    %c0 = arith.constant 0 : index
    %c0_0 = arith.constant 0 : index
    %c0_1 = arith.constant 0 : index
    %0 = vector.load %arg2[%c0, %c0_0, %c0_1] : memref<1x2x128xf32, #tpu.memory_space<vmem>>, vector<1x2x128xf32>
    %1 = vector.shape_cast %0 : vector<1x2x128xf32> to vector<2x128xf32>
    %c0_2 = arith.constant 0 : index
    %c0_3 = arith.constant 0 : index
    %2 = vector.load %arg3[%c0_2, %c0_3] : memref<2x128xf32, #tpu.memory_space<vmem>>, vector<2x128xf32>
    %c0_4 = arith.constant 0 : index
    %c0_5 = arith.constant 0 : index
    %3 = vector.load %arg4[%c0_4, %c0_5] : memref<2x128xf32, #tpu.memory_space<vmem>>, vector<2x128xf32>
    %4 = tpu.iota {dimensions = array<i32: 1>} : vector<2x128xi32>
    %c1_i32 = arith.constant 1 : i32
    %5 = vector.broadcast %c1_i32 : i32 to vector<2x128xi32>
    %6 = arith.andi %4, %5 : vector<2x128xi32>
    %c0_i32 = arith.constant 0 : i32
    %7 = vector.broadcast %c0_i32 : i32 to vector<2x128xi32>
    %8 = arith.cmpi eq, %6, %7 : vector<2x128xi32>
    %c127_i32 = arith.constant 127 : i32
    %9 = tpu.dynamic_rotate %1 by %c127_i32 dim 1 : vector<2x128xf32>, i32 -> vector<2x128xf32>
    %c1_i32_6 = arith.constant 1 : i32
    %10 = tpu.dynamic_rotate %1 by %c1_i32_6 dim 1 : vector<2x128xf32>, i32 -> vector<2x128xf32>
    %cst = arith.constant 0.000000e+00 : f32
    %11 = vector.broadcast %cst : f32 to vector<2x128xf32>
    %12 = arith.subf %11, %9 : vector<2x128xf32>
    %13 = arith.select %8, %12, %10 : vector<2x128xi1>, vector<2x128xf32>
    %14 = arith.mulf %1, %2 : vector<2x128xf32>
    %15 = arith.mulf %13, %3 : vector<2x128xf32>
    %16 = arith.addf %14, %15 : vector<2x128xf32>
    %c0_7 = arith.constant 0 : index
    %c0_8 = arith.constant 0 : index
    %c0_9 = arith.constant 0 : index
    %17 = vector.load %arg5[%c0_7, %c0_8, %c0_9] : memref<1x2x128xf32, #tpu.memory_space<vmem>>, vector<1x2x128xf32>
    %18 = vector.shape_cast %17 : vector<1x2x128xf32> to vector<2x128xf32>
    %19 = vector.shape_cast %16 : vector<2x128xf32> to vector<1x2x128xf32>
    tpu.vector_store %arg5[%c0_7, %c0_8, %c0_9], %19 {strides = array<i32>} : memref<1x2x128xf32, #tpu.memory_space<vmem>>, vector<1x2x128xf32>,
    return
  }
  func.func @transform_0(%arg0: i32, %arg1: i32) -> (i32, i32, i32) {
    %c0_i32 = arith.constant 0 : i32
    %c0_i32_0 = arith.constant 0 : i32
    return %arg1, %arg0, %c0_i32 : i32, i32, i32
  }
  func.func @transform_1(%arg0: i32, %arg1: i32) -> (i32, i32) {
    %c0_i32 = arith.constant 0 : i32
    %c0_i32_0 = arith.constant 0 : i32
    return %arg0, %c0_i32 : i32, i32
  }
  func.func @transform_2(%arg0: i32, %arg1: i32) -> (i32, i32) {
    %c0_i32 = arith.constant 0 : i32
    %c0_i32_0 = arith.constant 0 : i32
    return %arg0, %c0_i32 : i32, i32
  }
  func.func @transform_3(%arg0: i32, %arg1: i32) -> (i32, i32, i32) {
    %c0_i32 = arith.constant 0 : i32
    %c0_i32_0 = arith.constant 0 : i32
    return %arg1, %arg0, %c0_i32 : i32, i32, i32
  }
}

</mosaic_0001>

<bundles_post_ra>
// kernel: tpu_custom_call.1
= control target key start
LH: loop header
LB: loop body
LE: loop exit
PB: predicated region body
PF: predicated region fallthrough
CT: control target
= control target key end

     0   :  { %8 = vsyncpa [#allocation3], 0  ;;  %s799_s0 = inlined_call_operand.hbm [shape: f32[2,2,128], index: 0, kind: input, shape index: {}]   ;;  %s800_s1 = inlined_call_operand.hbm [shape: f32[2,128], index: 1, kind: input, shape index: {}]   ;;  %s801_s2 = inlined_call_operand.vmem [shape: f32[2,128], index: 2, kind: input, shape index: {}]   ;;  %s802_s3 = inlined_call_operand.hbm [shape: f32[2,2,128], index: 3, kind: output, shape index: {}]  }
   0x1   :  { %10 = vsyncpa [#allocation3 + $0x1], 0 }
   0x2   :  { %11 = vsyncpa [#allocation6], 0 }
   0x3   :  { %12 = vsyncpa [#allocation4], 0 }
   0x4   :  { %14 = vsyncpa [#allocation4 + $0x1], 0  ;;  %s635_s12 = smov 0   ;;  %s637_s13 = smov 0  }
   0x5   :  { %s639_s14 = smov 0   ;;  %s641_s15 = smov 0  }
   0x6   :  { %s643_s16 = smov 0   ;;  %s645_s17 = smov 0  }
   0x7 LB: > { %s379_s18 = sadd.s32 4294967295, %s608_s17   ;;  %s380_s19 = sadd.s32 4294967294, %s608_s17   ;;  %s608_s17 = sphi %s645_s17, %s20_s17   ;;  %s604_s16 = sphi %s643_s16, %s819_s16   ;;  %s600_s15 = sphi %s641_s15, %s818_s15   ;;  %s596_s14 = sphi %s639_s14, %s817_s14   ;;  %s592_s13 = sphi %s637_s13, %s816_s13   ;;  %s588_s12 = sphi %s635_s12, %s815_s12  }
   0x8   : > { %p54_p0 = scmp.ne.s32.totalorder %s592_s13, %s588_s12  ;;  %p669_p1 = scmp.eq.s32.totalorder %s379_s18, 0 }
   0x9   : > { %p673_p2 = scmp.eq.s32.totalorder %s379_s18, 1  ;;  %p138_p3 = scmp.eq.s32.totalorder %s380_s19, 1 }
   0xa   : > { %p679_p4 = por %p669_p1, %p54_p0  ;;  %p381_p5 = scmp.ge.s32.totalorder %s608_s17, 1 }
   0xb   : > { %p684_p6 = por %p138_p3, %p54_p0  ;;  %p145_p7 = scmp.lt.s32.totalorder %s608_s17, 3 }
   0xc   : > { %s806_s22 = scalar_select %p679_p4, 1, 0 }
   0xd   : > { %s807_s23 = scalar_select %p684_p6, 1, 0 }
   0xe   : > { %p689_p8 = pnand %p381_p5, %p145_p7  ;;  %s610_s25 = smov [#allocation5]  }
   0xf   : > { %s160_s26 = sshll.u32 %s610_s25, 4  ;;  %s29_s28 = sadd.s32 1, %s604_s16  ;;  %s161_s26 = int_to_ptr.vmem [resolvable:$true] %s160_s26 }
  0x10   : > { %p403_p10 = pneg %p689_p8  ;;  %s41_s29 = sadd.s32 1, %s596_s14 }
  0x11   : > { %p30_p12 = scmp.ge.s32.totalorder %s29_s28, 2  ;;  %s481_s30 = scalar_lea.vmem %s161_s26, 32 }
  0x12   : > { %p698_p11 = pnand %p403_p10, %p669_p1  ;;  %p482_p0 = scmp.ne.s32.totalorder %s161_s26, %s481_s30 }
  0x13   : > { %p489_p7 = scmp.lt.s32.totalorder %s161_s26, %s161_s26  ;;  %p490_p6 = scmp.lt.s32.totalorder %s481_s30, %s481_s30 }
  0x14   : > { %p472_p13 = pneg %p698_p11 }
  0x15   : > { %p491_p9 = por %p490_p6, %p489_p7 }
  0x16   : > { %p484_p3 = pnand %p482_p0, %p472_p13 }
  0x18   : > { %p485_p5 = pneg %p484_p3 }
  0x1a   : > { %p492_p4 = pnand %p491_p9, %p485_p5 }
  0x1c   : > { %495 = shalt.err (!%p492_p4)
}
  0x1d   : > { %406 = dma.hbm_to_vmem [thread:$0]  (!%p698_p11), %s800_s1, 32, %s161_s26, [#allocation6]  }
  0x1e   : > { %s821_s28 = smov (%p30_p12, %s29_s28), 0  ;;  %p48_p6 = scmp.ne.s32.totalorder %s596_s14, %s592_s13 }
  0x1f   : > { %p49_p4 = scmp.eq.s32.totalorder %s608_s17, 0  ;;  %s36_s6 = ssub.s32 %s604_s16, %s821_s28 }
  0x20   : > { %p416_p9 = scmp.lt.s32.totalorder %s608_s17, 2  ;;  %p39_p10 = scmp.eq.s32.totalorder %s36_s6, 0 }
  0x21   : > { %p50_p13 = por %p49_p4, %p48_p6  ;;  %p721_p0 = por %p673_p2, %p48_p6 }
  0x22   : > { %s178_s8 = sand.u32 1, %s596_s14   ;;  %s386_s11 = sshll.u32 %s604_s16, 5 }
  0x23   : > { %s727_s9 = scalar_select %p39_p10, %s596_s14, %s41_s29  }
  0x24   : > { %s385_s10 = sshll.u32 %s178_s8, 1  ;;  %s188_s25 = scalar_lea.hbm %s799_s0, %s386_s11 }
  0x25   : > { %s182_s26 = scalar_lea.vmem [#allocation2], %s385_s10  ;;  %p733_p11 = pnand %p416_p9, %p50_p13 }
  0x26   : > { %s190_s27 = sshll.u32 %s182_s26, 4  ;;  %s179_s21 = scalar_lea.sflag [#allocation3], %s178_s8  ;;  %s191_s27 = int_to_ptr.vmem [resolvable:$true] %s190_s27 }
  0x27   : > { %p498_p2 = pneg %p733_p11  ;;  %s509_s4 = scalar_lea.vmem %s191_s27, 32 }
  0x28   : > { %p510_p12 = scmp.ne.s32.totalorder %s191_s27, %s509_s4  ;;  %s611_s29 = smov [#allocation2]  }
  0x29   : > { %s514_s5 = sshll.u32 %s611_s29, 4  ;;  %s515_s5 = int_to_ptr.vmem [resolvable:$false] %s514_s5 }
  0x2a   : > { %p512_p3 = pnand %p510_p12, %p498_p2  ;;  %s516_s6 = scalar_lea.vmem %s515_s5, 64 }
  0x2b   : > { %p517_p7 = scmp.lt.s32.totalorder %s191_s27, %s515_s5  ;;  %p518_p6 = scmp.lt.s32.totalorder %s516_s6, %s509_s4 }
  0x2c   : > { %p513_p5 = pneg %p512_p3 }
  0x2d   : > { %p519_p4 = por %p518_p6, %p517_p7 }
  0x2f   : > { %p520_p10 = pnand %p519_p4, %p513_p5 }
  0x31   : > { %523 = shalt.err (!%p520_p10)
}
  0x32   : > { %410 = dma.hbm_to_vmem [thread:$0]  (!%p733_p11), %s188_s25, 32, %s191_s27, %s179_s21  }
  0x33   : > { %199 = sbr.rel (%p689_p8) target bundleno = 197 (0xc5), region = 32  ;;  %s744_s8 = sand.u32 (!%p689_p8), 1, %s592_s13  }
  0x34   : > { %s388_s10 = sshll.u32 (!%p689_p8), %s744_s8, 1  ;;  %s202_s11 = scalar_lea.sflag (!%p689_p8), [#allocation3], %s744_s8 }
  0x35   : > { %s205_s18 = scalar_lea.vmem (!%p689_p8), [#allocation2], %s388_s10  ;;  %p812_p9 = scmp.ne.s32.totalorder (!%p689_p8), %s806_s22, 0 }
  0x38   : > { %575 = dma.done.wait (%p812_p9), %s202_s11, 32  }
  0x39   : > { %577 = vsyncadd (%p812_p9), %s202_s11, 4294967264 }
  0x3a   : > { %579 = dma.done.wait (%p669_p1), [#allocation6], 32  }
  0x3b   : > { %581 = vsyncadd (%p669_p1), [#allocation6], 4294967264  ;;  %v240_v0 = vld [vmem:[%s205_s18] sm:$0x3]  ;;  %s612_s24 = smov 127   ;;  %s613_s19 = smov 1   ;;  %v243_v1 = vlaneseq }
  0x3c   : > { %247 = vrot.lane.b32.xlu0 %v240_v0, %s612_s24  ;;  %v241_v5 = vld [vmem:[#allocation5] sm:$0x3]  ;;  %v242_v7 = vld [vmem:[%s801_s2] sm:$0x3]  ;;  %s392_s20 = sshll.u32 %s600_s15, 5  ;;  %s235_s26 = scalar_lea.vmem [#allocation7], %s388_s10 }
  0x3d   : > { %v244_v2 = vand.u32 127, %v243_v1  ;;  %v253_v8 = vmul.f32 %v241_v5, %v240_v0  ;;  %s272_s27 = sshll.u32 %s235_s26, 4  ;;  %s270_s4 = scalar_lea.hbm %s802_s3, %s392_s20  ;;  %s273_s27 = int_to_ptr.vmem [resolvable:$true] %s272_s27 }
  0x3e   : > { %s258_s29 = scalar_lea.sflag [#allocation4], %s744_s8  ;;  %s524_s5 = scalar_lea.vmem %s273_s27, 32 }
  0x3f   : > { %v245_v3 = vand.u32 1, %v244_v2  ;;  %p525_p1 = scmp.ne.s32.totalorder %s273_s27, %s524_s5  ;;  %s614_s6 = smov [#allocation7]  }
  0x40   : > { %249 = vrot.lane.b32.xlu0 %v240_v0, %s613_s19  ;;  %s528_s11 = sshll.u32 %s614_s6, 4  ;;  %s529_s11 = int_to_ptr.vmem [resolvable:$false] %s528_s11 }
  0x41   : > { %vm246_vm0 = vcmp.eq.s32.totalorder %v245_v3, 0  ;;  %p526_p8 = pnand %p525_p1, %p721_p0  ;;  %s530_s15 = scalar_lea.vmem %s529_s11, 64 }
  0x42   : > { %p531_p11 = scmp.lt.s32.totalorder %s273_s27, %s529_s11  ;;  %p532_p2 = scmp.lt.s32.totalorder %s530_s15, %s524_s5 }
  0x43   : > { %p527_p13 = pneg %p526_p8 }
  0x44   : > { %p533_p12 = por %p532_p2, %p531_p11 }
  0x46   : > { %p534_p3 = pnand %p533_p12, %p527_p13 }
  0xae   : > { %v248_v4 = vpop.permute.xlu0 %247 }
  0xaf   : > { %v251_v6 = vsub.f32 0.0, %v248_v4 }
  0xb2   : > { %v250_v9 = vpop.permute.xlu0 %249 }
  0xb3   : > { %v252_v10 = vsel %vm246_vm0, %v251_v6, %v250_v9 }
  0xb4   : > { %v254_v11 = vmul.f32 %v252_v10, %v242_v7 }
  0xb6   : > { %v255_v12 = vadd.f32 %v254_v11, %v253_v8 }
  0xb8   : > { %256 = vst [vmem:[%s235_s26] sm:$0x3] %v255_v12 }
  0xb9   : > { %537 = shalt.err (!%p534_p3)
}
  0xba   : > { %s538_s10 = scalar_lea.hbm %s270_s4, 32  ;;  %s542_s24 = scalar_lea.hbm %s802_s3, 64 }
  0xbb   : > { %p539_p5 = scmp.ne.s32.totalorder %s270_s4, %s538_s10  ;;  %p543_p4 = scmp.lt.s32.totalorder %s270_s4, %s802_s3 }
  0xbc   : > { %p544_p10 = scmp.lt.s32.totalorder %s542_s24, %s538_s10 }
  0xbd   : > { %p540_p7 = pnand %p539_p5, %p721_p0 }
  0xbe   : > { %p545_p9 = por %p544_p10, %p543_p4 }
  0xbf   : > { %p541_p6 = pneg %p540_p7 }
  0xc1   : > { %p546_p1 = pnand %p545_p9, %p541_p6 }
  0xc3   : > { %549 = shalt.err (!%p546_p1)
}
  0xc4   : > { %401 = dma.vmem_to_hbm [thread:$0]  (%p721_p0), %s273_s27, 32, %s270_s4, %s258_s29  }
  0xc5 PF: > { %s284_s25 = sand.u32 1, %s588_s12   ;;  %p813_p8 = scmp.ne.s32.totalorder %s807_s23, 0 }
  0xc6   : > { %p814_p13 = scmp.ge.s32.totalorder %s608_s17, 2  ;;  %s285_s20 = scalar_lea.sflag [#allocation4], %s284_s25 }
  0xc8   : > { %p412_p11 = pnand %p814_p13, %p813_p8 }
  0xca   : > { %p413_p2 = pneg %p412_p11 }
  0xcc   : > { %583 = dma.done.wait (%p413_p2), %s285_s20, 32  }
  0xcd   : > { %585 = vsyncadd (%p413_p2), %s285_s20, 4294967264  ;;  %s20_s17 = sadd.s32 1, %s608_s17   ;;  %s815_s12 = smov %s592_s13 }
  0xce   : > { %p17_p12 = scmp.ge.s32.totalorder %s20_s17, 4   ;;  %s816_s13 = smov %s596_s14 }
  0xcf   : > { %s817_s14 = smov %s727_s9  ;;  %s818_s15 = smov %s604_s16 }
  0xd0   : > { %s819_s16 = smov %s821_s28  ;;  %19 = sbr.rel (!%p17_p12) target bundleno = 7 (0x7), region = 85 }
  0xd5   :  { %290 = vsyncpa [#allocation3], 1 }
  0xd6   :  { %292 = vsyncpa [#allocation3 + $0x1], 1 }
  0xd7   :  { %293 = vsyncpa [#allocation6], 1 }
  0xd8   :  { %294 = vsyncpa [#allocation4], 1 }
  0xd9   :  { %296 = vsyncpa [#allocation4 + $0x1], 1 }

</bundles_post_ra>
